<compile_context>
chip_gen: v7x
topology: tpu7x:2x2x1
jax: 0.10.0
libtpu: 0.0.40
codegen_flags: <defaults>
</compile_context>

<pallas_src>
import jax
import jax.numpy as jnp
from jax.experimental import pallas as pl
from jax.experimental.pallas import tpu as pltpu

HIDDEN = 64
LN_EPS = 1e-5
INV_HIDDEN = 1.0 / HIDDEN

MAX_TILE_B = 4096    # rows per grid step (upper bound); a few MiB of VMEM max
MIN_SPLIT_B = 2048   # past this batch, force an even >=2 step grid (v7x 2 TCs)


def _dqn_kernel(x_ref, w1_ref, b1_ref, w2_ref, b2_ref, g_ref, beta_ref,
                w3_ref, b3_ref, o_ref):
    x = x_ref[...].astype(jnp.float32)

    # Linear(input_dim, 64) + ReLU   (MXU matmul, f32 accumulate)
    h1 = jnp.dot(x, w1_ref[...], preferred_element_type=jnp.float32)
    h1 = jnp.maximum(h1 + b1_ref[...], 0.0)

    # Linear(64, 64)
    h2 = jnp.dot(h1, w2_ref[...], preferred_element_type=jnp.float32)
    h2 = h2 + b2_ref[...]

    # LayerNorm(64), two-pass statistics on the MXU (XLU stays idle):
    #   h2 @ ones(64,64) puts the row sum in every lane, so mean/var are
    #   already lane-broadcast and no cross-lane reduce or (B,1) broadcast is
    #   needed.  Biased variance, eps inside rsqrt -> matches torch LayerNorm.
    ones_hh = jnp.ones((HIDDEN, HIDDEN), jnp.float32)
    mean = jnp.dot(h2, ones_hh, preferred_element_type=jnp.float32) * INV_HIDDEN
    c = h2 - mean
    var = jnp.dot(c * c, ones_hh, preferred_element_type=jnp.float32) * INV_HIDDEN
    inv = jax.lax.rsqrt(var + LN_EPS)
    ln = c * inv * g_ref[...] + beta_ref[...]

    # ReLU
    h3 = jnp.maximum(ln, 0.0)

    # Linear(64, output_dim)
    out = jnp.dot(h3, w3_ref[...], preferred_element_type=jnp.float32)
    o_ref[...] = (out + b3_ref[...]).astype(o_ref.dtype)


def _round_up(n, m):
    return (n + m - 1) // m * m


def _cdiv(a, b):
    return (a + b - 1) // b


@jax.jit
def enhanced_dqn_forward(x, params):
    """x: (B, input_dim) float32. Returns (B, output_dim) float32."""
    w1, b1, w2, b2, ln_g, ln_b, w3, b3 = params
    batch, input_dim = x.shape
    output_dim = w3.shape[1]

    # --- Balanced batch tiling -----------------------------------------
    # Pick the step count first, then split the batch evenly (rounded to 8
    # sublanes) so padding is bounded by 8*n_steps rows, never a whole tile.
    n_steps = max(1, _cdiv(batch, MAX_TILE_B))
    if batch >= MIN_SPLIT_B:
        # v7x has 2 TensorCores: give both equal work (even step count >= 2).
        n_steps = _round_up(max(n_steps, 2), 2)
    tile_b = _round_up(_cdiv(batch, n_steps), 8)
    padded_b = n_steps * tile_b
    if padded_b != batch:
        x = jnp.pad(x, ((0, padded_b - batch), (0, 0)))
    grid = (n_steps,)

    x_spec = pl.BlockSpec((tile_b, input_dim), lambda i: (i, 0))
    o_spec = pl.BlockSpec((tile_b, output_dim), lambda i: (i, 0))

    # Weights / biases: full-array blocks, same block index every grid step,
    # so they stay VMEM-resident (no per-step re-DMA).
    def resident(arr):
        return pl.BlockSpec(arr.shape, lambda i: (0, 0))

    out = pl.pallas_call(
        _dqn_kernel,
        out_shape=jax.ShapeDtypeStruct((padded_b, output_dim), jnp.float32),
        grid=grid,
        in_specs=[
            x_spec,
            resident(w1), resident(b1),
            resident(w2), resident(b2),
            resident(ln_g), resident(ln_b),
            resident(w3), resident(b3),
        ],
        out_specs=o_spec,
        compiler_params=pltpu.CompilerParams(
            # Batch steps are independent -> shard across v7x's 2 TCs.
            dimension_semantics=("parallel",),
            # 32 MiB scoped budget: double-buffered (tile_b, in/out) f32 tiles
            # plus resident weights and f32 intermediates are a few MiB even
            # at tile_b=4096; leaves headroom on v7x's 64 MiB physical VMEM.
            vmem_limit_bytes=32 * 1024 * 1024,
        ),
    )(x, w1, b1, w2, b2, ln_g, ln_b, w3, b3)
    return out[:batch]


def init_params(key, input_dim, output_dim):
    """Deterministic synthetic parameters (PyTorch-like uniform fan-in init)."""
    ks = jax.random.split(key, 6)

    def lin(kw, kb, fan_in, fan_out):
        bound = 1.0 / jnp.sqrt(jnp.float32(fan_in))
        w = jax.random.uniform(kw, (fan_in, fan_out), jnp.float32, -bound, bound)
        b = jax.random.uniform(kb, (1, fan_out), jnp.float32, -bound, bound)
        return w, b

    w1, b1 = lin(ks[0], ks[1], input_dim, HIDDEN)
    w2, b2 = lin(ks[2], ks[3], HIDDEN, HIDDEN)
    w3, b3 = lin(ks[4], ks[5], HIDDEN, output_dim)
    ln_g = jnp.ones((1, HIDDEN), jnp.float32)   # LayerNorm weight init
    ln_b = jnp.zeros((1, HIDDEN), jnp.float32)  # LayerNorm bias init
    return (w1, b1, w2, b2, ln_g, ln_b, w3, b3)


def _reference_forward(x, params):
    """Pure-JAX reference for a correctness check."""
    w1, b1, w2, b2, ln_g, ln_b, w3, b3 = params
    h = jnp.maximum(x @ w1 + b1, 0.0)
    h = h @ w2 + b2
    mean = h.mean(-1, keepdims=True)
    var = ((h - mean) ** 2).mean(-1, keepdims=True)
    h = (h - mean) / jnp.sqrt(var + LN_EPS) * ln_g + ln_b
    h = jnp.maximum(h, 0.0)
    return h @ w3 + b3


if __name__ == "__main__":
    key = jax.random.PRNGKey(0)
    k_x, k_x2, k_p = jax.random.split(key, 3)

    batch, input_dim, output_dim = 8, 32, 8
    params = init_params(k_p, input_dim, output_dim)

    # Small demo batch (single grid step, no padding).
    x = jax.random.normal(k_x, (batch, input_dim), jnp.float32)
    out = jax.block_until_ready(enhanced_dqn_forward(x, params))
    ref = _reference_forward(x, params)
    assert out.shape == (batch, output_dim)
    assert jnp.allclose(out, ref, atol=1e-4, rtol=1e-4)

    # Larger batch exercising the balanced 2-step grid + padding path
    # (2500 >= MIN_SPLIT_B -> n_steps=2, tile_b=1256, 12 padded rows).
    big_batch = 2500
    x2 = jax.random.normal(k_x2, (big_batch, input_dim), jnp.float32)
    out2 = jax.block_until_ready(enhanced_dqn_forward(x2, params))
    ref2 = _reference_forward(x2, params)
    assert out2.shape == (big_batch, output_dim)
    assert jnp.allclose(out2, ref2, atol=1e-4, rtol=1e-4)

    print("KERNEL_OK")
</pallas_src>

<mosaic_0001>
module attributes {stable_mosaic.version = 11 : i64} {
  func.func @_dqn_kernel(%arg0: i32, %arg1: memref<8x32xf32, #tpu.memory_space<vmem>>, %arg2: memref<32x64xf32, #tpu.memory_space<vmem>>, %arg3: memref<1x64xf32, #tpu.memory_space<vmem>>, %arg4: memref<64x64xf32, #tpu.memory_space<vmem>>, %arg5: memref<1x64xf32, #tpu.memory_space<vmem>>, %arg6: memref<1x64xf32, #tpu.memory_space<vmem>>, %arg7: memref<1x64xf32, #tpu.memory_space<vmem>>, %arg8: memref<64x8xf32, #tpu.memory_space<vmem>>, %arg9: memref<1x8xf32, #tpu.memory_space<vmem>>, %arg10: memref<8x8xf32, #tpu.memory_space<vmem>>) attributes {dimension_semantics = [#tpu.dimension_semantics<parallel>], iteration_bounds = array<i64: 1>, scalar_prefetch = 0 : i64, scratch_operands = 0 : i64, tpu.core_type = #tpu.core_type<tc>, window_params = [{transform_indices = @transform_0, window_bounds = array<i64: 8, 32>}, {pipeline_mode = #tpu.pipeline_mode<synchronous>, transform_indices = @transform_1, window_bounds = array<i64: 32, 64>}, {pipeline_mode = #tpu.pipeline_mode<synchronous>, transform_indices = @transform_2, window_bounds = array<i64: 1, 64>}, {pipeline_mode = #tpu.pipeline_mode<synchronous>, transform_indices = @transform_3, window_bounds = array<i64: 64, 64>}, {pipeline_mode = #tpu.pipeline_mode<synchronous>, transform_indices = @transform_4, window_bounds = array<i64: 1, 64>}, {pipeline_mode = #tpu.pipeline_mode<synchronous>, transform_indices = @transform_5, window_bounds = array<i64: 1, 64>}, {pipeline_mode = #tpu.pipeline_mode<synchronous>, transform_indices = @transform_6, window_bounds = array<i64: 1, 64>}, {pipeline_mode = #tpu.pipeline_mode<synchronous>, transform_indices = @transform_7, window_bounds = array<i64: 64, 8>}, {pipeline_mode = #tpu.pipeline_mode<synchronous>, transform_indices = @transform_8, window_bounds = array<i64: 1, 8>}, {transform_indices = @transform_9, window_bounds = array<i64: 8, 8>}]} {
    %c0 = arith.constant 0 : index
    %c0_0 = arith.constant 0 : index
    %0 = vector.load %arg1[%c0, %c0_0] : memref<8x32xf32, #tpu.memory_space<vmem>>, vector<8x32xf32>
    %c0_1 = arith.constant 0 : index
    %c0_2 = arith.constant 0 : index
    %1 = vector.load %arg2[%c0_1, %c0_2] : memref<32x64xf32, #tpu.memory_space<vmem>>, vector<32x64xf32>
    %cst = arith.constant dense<0.000000e+00> : vector<8x64xf32>
    %2 = tpu.matmul %0, %1, %cst {dimension_numbers = #tpu.dot_dimension_numbers<[1], [0], [0], [1], [0, 0, 1, 1], [], []>} : vector<8x32xf32>, vector<32x64xf32>, vector<8x64xf32> -> vector<8x64xf32>
    %c0_3 = arith.constant 0 : index
    %c0_4 = arith.constant 0 : index
    %3 = vector.load %arg3[%c0_3, %c0_4] : memref<1x64xf32, #tpu.memory_space<vmem>>, vector<1x64xf32>
    %4 = vector.broadcast %3 : vector<1x64xf32> to vector<8x64xf32>
    %5 = arith.addf %2, %4 : vector<8x64xf32>
    %cst_5 = arith.constant 0.000000e+00 : f32
    %6 = vector.broadcast %cst_5 : f32 to vector<8x64xf32>
    %7 = arith.maximumf %5, %6 : vector<8x64xf32>
    %c0_6 = arith.constant 0 : index
    %c0_7 = arith.constant 0 : index
    %8 = vector.load %arg4[%c0_6, %c0_7] : memref<64x64xf32, #tpu.memory_space<vmem>>, vector<64x64xf32>
    %cst_8 = arith.constant dense<0.000000e+00> : vector<8x64xf32>
    %9 = tpu.matmul %7, %8, %cst_8 {dimension_numbers = #tpu.dot_dimension_numbers<[1], [0], [0], [1], [0, 0, 1, 1], [], []>} : vector<8x64xf32>, vector<64x64xf32>, vector<8x64xf32> -> vector<8x64xf32>
    %c0_9 = arith.constant 0 : index
    %c0_10 = arith.constant 0 : index
    %10 = vector.load %arg5[%c0_9, %c0_10] : memref<1x64xf32, #tpu.memory_space<vmem>>, vector<1x64xf32>
    %11 = vector.broadcast %10 : vector<1x64xf32> to vector<8x64xf32>
    %12 = arith.addf %9, %11 : vector<8x64xf32>
    %cst_11 = arith.constant 1.000000e+00 : f32
    %13 = vector.broadcast %cst_11 : f32 to vector<64x64xf32>
    %cst_12 = arith.constant dense<0.000000e+00> : vector<8x64xf32>
    %14 = tpu.matmul %12, %13, %cst_12 {dimension_numbers = #tpu.dot_dimension_numbers<[1], [0], [0], [1], [0, 0, 1, 1], [], []>} : vector<8x64xf32>, vector<64x64xf32>, vector<8x64xf32> -> vector<8x64xf32>
    %cst_13 = arith.constant 1.562500e-02 : f32
    %15 = vector.broadcast %cst_13 : f32 to vector<8x64xf32>
    %16 = arith.mulf %14, %15 : vector<8x64xf32>
    %17 = arith.subf %12, %16 : vector<8x64xf32>
    %18 = arith.mulf %17, %17 : vector<8x64xf32>
    %cst_14 = arith.constant dense<0.000000e+00> : vector<8x64xf32>
    %19 = tpu.matmul %18, %13, %cst_14 {dimension_numbers = #tpu.dot_dimension_numbers<[1], [0], [0], [1], [0, 0, 1, 1], [], []>} : vector<8x64xf32>, vector<64x64xf32>, vector<8x64xf32> -> vector<8x64xf32>
    %cst_15 = arith.constant 1.562500e-02 : f32
    %20 = vector.broadcast %cst_15 : f32 to vector<8x64xf32>
    %21 = arith.mulf %19, %20 : vector<8x64xf32>
    %cst_16 = arith.constant 9.99999974E-6 : f32
    %22 = vector.broadcast %cst_16 : f32 to vector<8x64xf32>
    %23 = arith.addf %21, %22 : vector<8x64xf32>
    %24 = math.rsqrt %23 : vector<8x64xf32>
    %25 = arith.mulf %17, %24 : vector<8x64xf32>
    %c0_17 = arith.constant 0 : index
    %c0_18 = arith.constant 0 : index
    %26 = vector.load %arg6[%c0_17, %c0_18] : memref<1x64xf32, #tpu.memory_space<vmem>>, vector<1x64xf32>
    %27 = vector.broadcast %26 : vector<1x64xf32> to vector<8x64xf32>
    %28 = arith.mulf %25, %27 : vector<8x64xf32>
    %c0_19 = arith.constant 0 : index
    %c0_20 = arith.constant 0 : index
    %29 = vector.load %arg7[%c0_19, %c0_20] : memref<1x64xf32, #tpu.memory_space<vmem>>, vector<1x64xf32>
    %30 = vector.broadcast %29 : vector<1x64xf32> to vector<8x64xf32>
    %31 = arith.addf %28, %30 : vector<8x64xf32>
    %cst_21 = arith.constant 0.000000e+00 : f32
    %32 = vector.broadcast %cst_21 : f32 to vector<8x64xf32>
    %33 = arith.maximumf %31, %32 : vector<8x64xf32>
    %c0_22 = arith.constant 0 : index
    %c0_23 = arith.constant 0 : index
    %34 = vector.load %arg8[%c0_22, %c0_23] : memref<64x8xf32, #tpu.memory_space<vmem>>, vector<64x8xf32>
    %cst_24 = arith.constant dense<0.000000e+00> : vector<8x8xf32>
    %35 = tpu.matmul %33, %34, %cst_24 {dimension_numbers = #tpu.dot_dimension_numbers<[1], [0], [0], [1], [0, 0, 1, 1], [], []>} : vector<8x64xf32>, vector<64x8xf32>, vector<8x8xf32> -> vector<8x8xf32>
    %c0_25 = arith.constant 0 : index
    %c0_26 = arith.constant 0 : index
    %36 = vector.load %arg9[%c0_25, %c0_26] : memref<1x8xf32, #tpu.memory_space<vmem>>, vector<1x8xf32>
    %37 = vector.broadcast %36 : vector<1x8xf32> to vector<8x8xf32>
    %38 = arith.addf %35, %37 : vector<8x8xf32>
    %c0_27 = arith.constant 0 : index
    %c0_28 = arith.constant 0 : index
    %39 = vector.load %arg10[%c0_27, %c0_28] : memref<8x8xf32, #tpu.memory_space<vmem>>, vector<8x8xf32>
    tpu.vector_store %arg10[%c0_27, %c0_28], %38 {strides = array<i32>} : memref<8x8xf32, #tpu.memory_space<vmem>>, vector<8x8xf32>,
    return
  }
  func.func @transform_0(%arg0: i32) -> (i32, i32) {
    %c0_i32 = arith.constant 0 : i32
    %c0_i32_0 = arith.constant 0 : i32
    return %arg0, %c0_i32 : i32, i32
  }
  func.func @transform_1(%arg0: i32) -> (i32, i32) {
    %c0_i32 = arith.constant 0 : i32
    %c0_i32_0 = arith.constant 0 : i32
    %c0_i32_1 = arith.constant 0 : i32
    return %c0_i32, %c0_i32_0 : i32, i32
  }
  func.func @transform_2(%arg0: i32) -> (i32, i32) {
    %c0_i32 = arith.constant 0 : i32
    %c0_i32_0 = arith.constant 0 : i32
    %c0_i32_1 = arith.constant 0 : i32
    return %c0_i32, %c0_i32_0 : i32, i32
  }
  func.func @transform_3(%arg0: i32) -> (i32, i32) {
    %c0_i32 = arith.constant 0 : i32
    %c0_i32_0 = arith.constant 0 : i32
    %c0_i32_1 = arith.constant 0 : i32
    return %c0_i32, %c0_i32_0 : i32, i32
  }
  func.func @transform_4(%arg0: i32) -> (i32, i32) {
    %c0_i32 = arith.constant 0 : i32
    %c0_i32_0 = arith.constant 0 : i32
    %c0_i32_1 = arith.constant 0 : i32
    return %c0_i32, %c0_i32_0 : i32, i32
  }
  func.func @transform_5(%arg0: i32) -> (i32, i32) {
    %c0_i32 = arith.constant 0 : i32
    %c0_i32_0 = arith.constant 0 : i32
    %c0_i32_1 = arith.constant 0 : i32
    return %c0_i32, %c0_i32_0 : i32, i32
  }
  func.func @transform_6(%arg0: i32) -> (i32, i32) {
    %c0_i32 = arith.constant 0 : i32
    %c0_i32_0 = arith.constant 0 : i32
    %c0_i32_1 = arith.constant 0 : i32
    return %c0_i32, %c0_i32_0 : i32, i32
  }
  func.func @transform_7(%arg0: i32) -> (i32, i32) {
    %c0_i32 = arith.constant 0 : i32
    %c0_i32_0 = arith.constant 0 : i32
    %c0_i32_1 = arith.constant 0 : i32
    return %c0_i32, %c0_i32_0 : i32, i32
  }
  func.func @transform_8(%arg0: i32) -> (i32, i32) {
    %c0_i32 = arith.constant 0 : i32
    %c0_i32_0 = arith.constant 0 : i32
    %c0_i32_1 = arith.constant 0 : i32
    return %c0_i32, %c0_i32_0 : i32, i32
  }
  func.func @transform_9(%arg0: i32) -> (i32, i32) {
    %c0_i32 = arith.constant 0 : i32
    %c0_i32_0 = arith.constant 0 : i32
    return %arg0, %c0_i32 : i32, i32
  }
}

</mosaic_0001>

<bundles_post_ra>
// kernel: enhanced_dqn_forward.1
= control target key start
LH: loop header
LB: loop body
LE: loop exit
PB: predicated region body
PF: predicated region fallthrough
CT: control target
= control target key end

     0   :  { %14 = vsyncpa [#allocation3], 0  ;;  %s920_s0 = inlined_call_operand.vmem [shape: f32[8,32], index: 0, kind: input, shape index: {}]   ;;  %s921_s1 = inlined_call_operand.hbm [shape: f32[32,64], index: 1, kind: input, shape index: {}]   ;;  %s922_s2 = inlined_call_operand.vmem [shape: f32[1,64], index: 2, kind: input, shape index: {}]   ;;  %s923_s3 = inlined_call_operand.vmem [shape: f32[64,64], index: 3, kind: input, shape index: {}]   ;;  %s924_s4 = inlined_call_operand.vmem [shape: f32[1,64], index: 4, kind: input, shape index: {}]   ;;  %s925_s5 = inlined_call_operand.vmem [shape: f32[1,64], index: 5, kind: input, shape index: {}]   ;;  %s926_s6 = inlined_call_operand.vmem [shape: f32[1,64], index: 6, kind: input, shape index: {}]   ;;  %s927_s7 = inlined_call_operand.vmem [shape: f32[64,8], index: 7, kind: input, shape index: {}]   ;;  %s928_s8 = inlined_call_operand.vmem [shape: f32[1,8], index: 8, kind: input, shape index: {}]   ;;  %s929_s9 = inlined_call_operand.hbm [shape: f32[8,8], index: 9, kind: output, shape index: {}]  }
   0x1   :  { %15 = vsyncpa [#allocation4], 0  ;;  %s740_s30 = smov [#allocation2]   ;;  %s692_s13 = scalar_lea.hbm %s921_s1, 512 }
   0x2   :  { %s23_s10 = sshll.u32 %s740_s30, 4  ;;  %p693_p0 = scmp.ne.s32.totalorder %s921_s1, %s692_s13  ;;  %s24_s10 = int_to_ptr.vmem [resolvable:$true] %s23_s10 }
   0x3   :  { %p696_p1 = scmp.lt.u32.totalorder %s692_s13, %s921_s1 }
   0x5   :  { %p698_p2 = pnand %p696_p1, %p693_p0 }
   0x7   :  { %701 = shalt.err (!%p698_p2)
}
   0x8   :  { %s702_s18 = scalar_lea.vmem %s24_s10, 512  ;;  %p707_p4 = scmp.lt.s32.totalorder %s24_s10, %s24_s10 }
   0x9   :  { %p703_p3 = scmp.ne.s32.totalorder %s24_s10, %s702_s18  ;;  %p708_p5 = scmp.lt.s32.totalorder %s702_s18, %s702_s18 }
   0xb   :  { %p709_p6 = por %p708_p5, %p707_p4 }
   0xd   :  { %p710_p7 = pnand %p709_p6, %p703_p3 }
   0xf   :  { %713 = shalt.err (!%p710_p7)
}
  0x10   :  { %s741_s19 = smov 128   ;;  %s742_s20 = smov 8  }
  0x11   :  { %29 = dma.hbm_to_vmem [thread:$0]  %s921_s1, 512, %s24_s10, [#allocation3], %s741_s19, %s741_s19, %s742_s20  }
  0x12   :  { %736 = dma.done.wait [#allocation3], 512  }
  0x13   :  { %737 = vsyncadd [#allocation3], 4294966784  ;;  %v743_v0 = vmov 0.0|0.0   ;;  %vm744_vm0 = vmmov 0   ;;  %v745_v1 = vmov 0.0   ;;  %v48_v2 = vld [vmem:[#allocation2] sm:$0xff] }
  0x14   :  { %636 = vmatprep.subr.bf16.mxu0 %v743_v0  ;;  %557 = vmatprep.mubr.msk.f32.mxu0 %vm744_vm0, %v745_v1  ;;  %v49_v3 = vld [vmem:[#allocation2 + $0x8] sm:$0xff]  ;;  %v50_v4 = vld [vmem:[#allocation2 + $0x10] sm:$0xff]  ;;  %v51_v6 = vld [vmem:[#allocation2 + $0x18] sm:$0xff]  ;;  %vm59_vm1 = vcmask 261120   ;;  %v746_v21 = vmov 1.0|1.0  }
  0x15   :  { %642 = vmatprep.subr.bf16.mxu1 %v743_v0  ;;  %576 = vmatprep.mubr.msk.f32.mxu1 %vm744_vm0, %v745_v1  ;;  %v637_v5 = vpack.c.bf16 %v49_v3, %v48_v2  ;;  %v134_v7 = vld [vmem:[%s923_s3] sm:$0xff]  ;;  %v135_v8 = vld [vmem:[%s923_s3 + $0x8] sm:$0xff]  ;;  %v136_v9 = vld [vmem:[%s923_s3 + $0x10] sm:$0xff]  ;;  %v640_v11 = vpack.c.bf16 %v51_v6, %v50_v4  ;;  %vm149_vm2 = vcmask 523264   ;;  %vm481_vm3 = vcmask 64512  }
  0x16   :  { %v137_v10 = vld [vmem:[%s923_s3 + $0x18] sm:$0xff]  ;;  %v643_v12 = vpack.c.bf16 %v135_v8, %v134_v7  ;;  %v138_v14 = vld [vmem:[%s923_s3 + $0x20] sm:$0xff]  ;;  %v139_v15 = vld [vmem:[%s923_s3 + $0x28] sm:$0xff] }
  0x17   :  { %638 = vmatpush3.bf16.msra.mxu0 %v637_v5  ;;  %v646_v13 = vpack.c.bf16 %v137_v10, %v136_v9  ;;  %v47_v16 = vld [vmem:[%s920_s0] sm:$0xff]  ;;  %v649_v17 = vpack.c.bf16 %v139_v15, %v138_v14  ;;  %v140_v18 = vld [vmem:[%s923_s3 + $0x30] sm:$0xff]  ;;  %v141_v19 = vld [vmem:[%s923_s3 + $0x38] sm:$0xff]  ;;  %s747_s0 = smov [#allocation5]  }
  0x18   :  { %639 = vmatprep.subr.bf16.mxu0 %v743_v0  ;;  %644 = vmatpush3.bf16.msra.mxu1 %v643_v12  ;;  %v652_v20 = vpack.c.bf16 %v141_v19, %v140_v18  ;;  %v498_v22 = vld [vmem:[%s922_s2] ss:$0 sm:$0xff]  ;;  %v394_v37 = vld [vmem:[%s927_s7 + $0x8] sm:$0xff]  ;;  %v395_v39 = vld [vmem:[%s927_s7 + $0x10] sm:$0xff]  ;;  %s489_s18 = sshll.u32 %s747_s0, 4  ;;  %s490_s18 = int_to_ptr.vmem [resolvable:$true] %s489_s18 }
  0x19   :  { %645 = vmatprep.subr.bf16.mxu1 %v743_v0  ;;  %v500_v27 = vld [vmem:[%s924_s4] ss:$0 sm:$0xff]  ;;  %v396_v40 = vld [vmem:[%s927_s7 + $0x18] sm:$0xff]  ;;  %v398_v43 = vld [vmem:[%s927_s7 + $0x28] sm:$0xff]  ;;  %p719_p9 = scmp.lt.s32.totalorder %s490_s18, %s490_s18 }
  0x1a   :  { %v393_v36 = vld [vmem:[%s927_s7] sm:$0xff]  ;;  %v674_v41 = vpack.c.bf16 %v396_v40, %v395_v39  ;;  %v399_v45 = vld [vmem:[%s927_s7 + $0x30] sm:$0xff]  ;;  %v400_v46 = vld [vmem:[%s927_s7 + $0x38] sm:$0xff] }
  0x1b   :  { %641 = vmatpush3.bf16.msra.mxu0 %v640_v11  ;;  %v671_v38 = vpack.c.bf16 %v394_v37, %v393_v36  ;;  %v397_v42 = vld [vmem:[%s927_s7 + $0x20] sm:$0xff]  ;;  %v680_v47 = vpack.c.bf16 %v400_v46, %v399_v45 }
  0x1c   :  { %654 = vmatprep.subr.bf16.mxu0 %v743_v0  ;;  %647 = vmatpush3.bf16.msra.mxu1 %v646_v13  ;;  %v677_v44 = vpack.c.bf16 %v398_v43, %v397_v42  ;;  %v504_v53 = vld [vmem:[%s925_s5] ss:$0 sm:$0xff]  ;;  %s714_s5 = scalar_lea.vmem %s490_s18, 128 }
  0x1d   :  { %648 = vmatprep.subr.bf16.mxu1 %v743_v0  ;;  %v505_v55 = vld [vmem:[%s926_s6] ss:$0 sm:$0xff]  ;;  %p715_p8 = scmp.ne.s32.totalorder %s490_s18, %s714_s5  ;;  %p720_p10 = scmp.lt.s32.totalorder %s714_s5, %s714_s5 }
  0x1e   :  { %558 = vmatmul.mubr.msk.f32.vlgmr.msra.gmra.mrb[0].mxu0 %vm59_vm1, %v47_v16  ;;  %v506_v59 = vld [vmem:[%s928_s8] ss:$0 sm:$0xff] }
  0x1f   :  { %595 = vmatprep.mubr.msk.f32.mxu0 %vm744_vm0, %v745_v1  ;;  %655 = vmatpush3.bf16.msra.mxu0 %v746_v21  ;;  %p721_p11 = por %p720_p10, %p719_p9 }
  0x20   :  { %650 = vmatpush3.bf16.msra.mxu1 %v649_v17  ;;  %656 = vmatprep.subr.bf16.mxu0 %v743_v0 }
  0x21   :  { %651 = vmatprep.subr.bf16.mxu1 %v743_v0  ;;  %p722_p12 = pnand %p721_p11, %p715_p8 }
  0x23   :  { %657 = vmatpush3.bf16.msra.mxu0 %v746_v21 }
  0x24   :  { %653 = vmatpush3.bf16.msra.mxu1 %v652_v20  ;;  %658 = vmatprep.subr.bf16.mxu0 %v743_v0 }
  0x25   :  { %662 = vmatprep.subr.bf16.mxu1 %v743_v0 }
  0x27   :  { %659 = vmatpush3.bf16.msra.mxu0 %v746_v21 }
  0x28   :  { %660 = vmatprep.subr.bf16.mxu0 %v743_v0 }
  0x2b   :  { %661 = vmatpush3.bf16.msra.mxu0 %v746_v21 }
  0x2c   :  { %670 = vmatprep.subr.bf16.mxu0 %v743_v0 }
  0xf1   :  { %v129_v23 = vpop.f32.mrb[0].mxu0 }
  0xf2   :  { %v130_v24 = vadd.f32 %v498_v22, %v129_v23  ;;  %v559_v25 = vpop.f32.mrb[1].mxu0 }
  0xf4   :  { %v133_v26 = vmax.f32 %v130_v24, 0.0 }
  0xf6   :  { %577 = vmatmul.mubr.msk.f32.vlgmr.msra.gmra.mrb[0].mxu1 %vm149_vm2, %v133_v26 }
  0xf7   :  { %663 = vmatpush3.bf16.msra.mxu1 %v746_v21  ;;  %614 = vmatprep.mubr.msk.f32.mxu1 %vm744_vm0, %v745_v1 }
  0xf8   :  { %664 = vmatprep.subr.bf16.mxu1 %v743_v0 }
  0xfb   :  { %665 = vmatpush3.bf16.msra.mxu1 %v746_v21 }
  0xfc   :  { %666 = vmatprep.subr.bf16.mxu1 %v743_v0 }
  0xff   :  { %667 = vmatpush3.bf16.msra.mxu1 %v746_v21 }
 0x100   :  { %668 = vmatprep.subr.bf16.mxu1 %v743_v0 }
 0x103   :  { %669 = vmatpush3.bf16.msra.mxu1 %v746_v21 }
 0x1c9   :  { %v219_v28 = vpop.f32.mrb[0].mxu1 }
 0x1ca   :  { %v220_v29 = vadd.f32 %v500_v27, %v219_v28  ;;  %v578_v30 = vpop.f32.mrb[1].mxu1 }
 0x1cc   :  { %596 = vmatmul.mubr.msk.f32.vlgmr.msra.gmra.mrb[2].mxu0 %vm149_vm2, %v220_v29 }
 0x1cd   :  { %633 = vmatprep.mubr.msk.f32.mxu0 %vm744_vm0, %v745_v1  ;;  %672 = vmatpush3.bf16.msra.mxu0 %v671_v38 }
 0x1ce   :  { %673 = vmatprep.subr.bf16.mxu0 %v743_v0 }
 0x1d1   :  { %675 = vmatpush3.bf16.msra.mxu0 %v674_v41 }
 0x1d2   :  { %676 = vmatprep.subr.bf16.mxu0 %v743_v0 }
 0x1d5   :  { %678 = vmatpush3.bf16.msra.mxu0 %v677_v44 }
 0x1d6   :  { %679 = vmatprep.subr.bf16.mxu0 %v743_v0 }
 0x1d9   :  { %681 = vmatpush3.bf16.msra.mxu0 %v680_v47 }
 0x29f   :  { %v292_v31 = vpop.f32.mrb[2].mxu0 }
 0x2a0   :  { %v296_v32 = vmul.f32 0.015625, %v292_v31  ;;  %v597_v33 = vpop.f32.mrb[3].mxu0 }
 0x2a2   :  { %v297_v34 = vsub.f32 %v220_v29, %v296_v32 }
 0x2a4   :  { %v298_v35 = vmul.f32 %v297_v34, %v297_v34 }
 0x2a6   :  { %615 = vmatmul.mubr.msk.f32.vlgmr.msra.gmra.mrb[2].mxu1 %vm149_vm2, %v298_v35 }
 0x379   :  { %v368_v48 = vpop.f32.mrb[2].mxu1 }
 0x37a   :  { %v372_v49 = vmul.f32 0.015625, %v368_v48  ;;  %v616_v50 = vpop.f32.mrb[3].mxu1 }
 0x37c   :  { %v373_v51 = vadd.f32 1e-05, %v372_v49 }
 0x37e   :  { %690 = vrsqrt.f32 %v373_v51 }
 0x388   :  { %v691_v52 = vpop.eup %690 }
 0x389   :  { %v375_v54 = vmul.f32 %v691_v52, %v297_v34 }
 0x38b   :  { %v383_v56 = vmul.f32 %v504_v53, %v375_v54 }
 0x38d   :  { %v391_v57 = vadd.f32 %v505_v55, %v383_v56 }
 0x38f   :  { %v392_v58 = vmax.f32 %v391_v57, 0.0 }
 0x391   :  { %634 = vmatmul.mubr.msk.f32.vlgmr.msra.gmra.mrb[4].mxu0 %vm149_vm2, %v392_v58 }
 0x464   :  { %v477_v60 = vpop.f32.mrb[4].mxu0 }
 0x465   :  { %v478_v61 = vadd.f32 %v506_v59, %v477_v60  ;;  %v635_v62 = vpop.f32.mrb[5].mxu0 }
 0x467   :  { %482 = vst.msk [vmem:[#allocation5] sm:$0xff] %vm481_vm3, %v478_v61 }
 0x468   :  { %725 = shalt.err (!%p722_p12)
}
 0x469   :  { %s726_s2 = scalar_lea.hbm %s929_s9, 128 }
 0x46a   :  { %p727_p13 = scmp.ne.s32.totalorder %s929_s9, %s726_s2  ;;  %p730_p0 = scmp.lt.u32.totalorder %s726_s2, %s929_s9 }
 0x46c   :  { %p732_p1 = pnand %p730_p0, %p727_p13 }
 0x46e   :  { %735 = shalt.err (!%p732_p1)
}
 0x46f   :  { %492 = dma.vmem_to_hbm [thread:$0]  %s490_s18, 128, %s929_s9, [#allocation4]  }
 0x470   :  { %738 = dma.done.wait [#allocation4], 128  }
 0x471   :  { %739 = vsyncadd [#allocation4], 4294967168 }
 0x472   :  { %496 = vsyncpa [#allocation3], 1 }
 0x473   :  { %497 = vsyncpa [#allocation4], 1 }

</bundles_post_ra>
